<compile_context>
chip_gen: v7x
topology: tpu7x:2x2x1
jax: 0.10.0
libtpu: 0.0.40
codegen_flags: <defaults>
</compile_context>

<pallas_src>
import jax
import jax.numpy as jnp
from jax.experimental import pallas as pl
from jax.experimental.pallas import tpu as pltpu

LANES = 128
MAX_TILE_ROWS = 2048  # (2048,128) f32 = 1 MiB/tile; ~4 MiB double-buffered


def _net_kernel(p_ref, x_ref, o_ref):
    # p_ref: SMEM f32[16] = [w1[0..4], b1[0..4], w2[0..4], b2]
    # x_ref / o_ref: VMEM (tile_rows, 128) lane-dense batch tiles.
    x = x_ref[...].astype(jnp.float32)
    acc = jnp.broadcast_to(p_ref[15], x.shape)        # start from fc2 bias
    for j in range(5):                                # 5 hidden units, VPU FMAs
        h = jnp.maximum(x * p_ref[j] + p_ref[5 + j], 0.0)
        acc = acc + h * p_ref[10 + j]
    o_ref[...] = acc.astype(o_ref.dtype)


def _round_up(a, m):
    return ((a + m - 1) // m) * m


def net_forward(x, w1, b1, w2, b2, *, io_dtype=jnp.float32):
    """Forward pass of Net.

    x:  (..., 1) float32 (torch-style input to Linear(1, 5))
    w1: (5, 1)  fc1.weight   b1: (5,)  fc1.bias
    w2: (1, 5)  fc2.weight   b2: (1,)  fc2.bias
    io_dtype: dtype used to stream the batch through HBM (f32 default;
              bf16 halves bandwidth on v6e/v7x at reduced precision).
    Returns (..., 1) float32.
    """
    orig_shape = x.shape
    assert orig_shape[-1] == 1, "Linear(1, 5) expects last dim == 1"
    x_flat = x.reshape(-1)
    B = x_flat.shape[0]
    if B == 0:
        return jnp.zeros(orig_shape, jnp.float32)

    io_dtype = jnp.dtype(io_dtype)
    sublane = 8 * (4 // io_dtype.itemsize)            # 8 for f32, 16 for bf16

    # Pad only to a lane multiple (<=127 elements); free when B % 128 == 0.
    padded = _round_up(B, LANES)
    pad = padded - B
    x_flat = x_flat.astype(io_dtype)
    if pad:
        x_flat = jnp.pad(x_flat, (0, pad))
    rows = padded // LANES
    x2d = x_flat.reshape(rows, LANES)                 # free (no copy) under jit

    # Tile sizing: single full-extent block for tiny batches; otherwise >=2
    # balanced tiles (keeps both v7x TensorCores busy), capped at ~1 MiB.
    if rows <= sublane:
        tile_rows = rows                              # block == full array dim
    else:
        tile_rows = min(MAX_TILE_ROWS, _round_up(pl.cdiv(rows, 2), sublane))
    n_tiles = pl.cdiv(rows, tile_rows)                # non-dividing grid is OK:
                                                      # edge block is masked.

    # Flatten all 16 parameters into one SMEM-resident vector.
    params = jnp.concatenate(
        [w1.reshape(-1), b1.reshape(-1), w2.reshape(-1), b2.reshape(-1)]
    ).astype(jnp.float32)  # (16,)

    out2d = pl.pallas_call(
        _net_kernel,
        out_shape=jax.ShapeDtypeStruct((rows, LANES), io_dtype),
        grid_spec=pltpu.PrefetchScalarGridSpec(
            num_scalar_prefetch=0,
            grid=(n_tiles,),
            in_specs=[
                pl.BlockSpec(memory_space=pltpu.MemorySpace.SMEM),       # params
                pl.BlockSpec((tile_rows, LANES), lambda i: (i, 0)),      # x tile
            ],
            out_specs=pl.BlockSpec((tile_rows, LANES), lambda i: (i, 0)),
        ),
        compiler_params=pltpu.CompilerParams(
            dimension_semantics=("parallel",),
        ),
    )(params, x2d)

    out_flat = out2d.reshape(-1)
    if pad:
        out_flat = out_flat[:B]                       # only when B unaligned
    return out_flat.astype(jnp.float32).reshape(orig_shape[:-1] + (1,))


def init_params(key):
    """Deterministic init matching torch nn.Linear layouts/shapes."""
    k1, k2, k3, k4 = jax.random.split(key, 4)
    bound1 = 1.0                      # 1/sqrt(in=1)
    w1 = jax.random.uniform(k1, (5, 1), jnp.float32, -bound1, bound1)
    b1 = jax.random.uniform(k2, (5,), jnp.float32, -bound1, bound1)
    bound2 = 1.0 / jnp.sqrt(5.0)      # 1/sqrt(in=5)
    w2 = jax.random.uniform(k3, (1, 5), jnp.float32, -bound2, bound2)
    b2 = jax.random.uniform(k4, (1,), jnp.float32, -bound2, bound2)
    return w1, b1, w2, b2


if __name__ == "__main__":
    key = jax.random.PRNGKey(0)
    kx1, kx2, kx3, kp = jax.random.split(key, 4)
    w1, b1, w2, b2 = init_params(kp)

    def ref_fn(x):
        h = jnp.maximum(x @ w1.T + b1, 0.0)
        return h @ w2.T + b2

    fwd = jax.jit(net_forward)                                     # f32 path
    fwd_bf16 = jax.jit(lambda *a: net_forward(*a, io_dtype=jnp.bfloat16))

    # Tiny batch: single (1,128) full-extent block.
    x = jax.random.normal(kx1, (8, 1), jnp.float32)
    out = jax.block_until_ready(fwd(x, w1, b1, w2, b2))
    assert out.shape == (8, 1)
    assert jnp.allclose(out, ref_fn(x), atol=1e-5, rtol=1e-5)

    # Lane-aligned batch with a NON-dividing grid (rows=21, tile_rows=16):
    # exercises edge-block masking; no wrapper pad and no tail slice.
    x = jax.random.normal(kx2, (2688, 1), jnp.float32)
    out = jax.block_until_ready(fwd(x, w1, b1, w2, b2))
    assert out.shape == (2688, 1)
    assert jnp.allclose(out, ref_fn(x), atol=1e-5, rtol=1e-5)

    # Unaligned batch: minimal (<=127 elem) pad + tail slice path.
    x = jax.random.normal(kx3, (1000, 1), jnp.float32)
    out = jax.block_until_ready(fwd(x, w1, b1, w2, b2))
    assert out.shape == (1000, 1)
    assert jnp.allclose(out, ref_fn(x), atol=1e-5, rtol=1e-5)

    # Optional bf16-streaming path (bandwidth saver on v6e/v7x), loose tol.
    xb = jax.random.normal(kx2, (4096, 1), jnp.float32)
    outb = jax.block_until_ready(fwd_bf16(xb, w1, b1, w2, b2))
    assert outb.shape == (4096, 1)
    assert jnp.allclose(outb, ref_fn(xb), atol=5e-2, rtol=5e-2)

    print("KERNEL_OK")
</pallas_src>

<mosaic_0001>
module attributes {stable_mosaic.version = 11 : i64} {
  func.func @_net_kernel(%arg0: i32, %arg1: memref<16xf32, #tpu.memory_space<smem>>, %arg2: memref<1x128xf32, #tpu.memory_space<vmem>>, %arg3: memref<1x128xf32, #tpu.memory_space<vmem>>) attributes {dimension_semantics = [#tpu.dimension_semantics<parallel>], iteration_bounds = array<i64: 1>, scalar_prefetch = 0 : i64, scratch_operands = 0 : i64, tpu.core_type = #tpu.core_type<tc>, window_params = [{transform_indices = @transform_0, window_bounds = array<i64: 16>}, {transform_indices = @transform_1, window_bounds = array<i64: 1, 128>}, {transform_indices = @transform_2, window_bounds = array<i64: 1, 128>}]} {
    %c0 = arith.constant 0 : index
    %c0_0 = arith.constant 0 : index
    %0 = vector.load %arg2[%c0, %c0_0] : memref<1x128xf32, #tpu.memory_space<vmem>>, vector<1x128xf32>
    %c15 = arith.constant 15 : index
    %1 = memref.load %arg1[%c15] : memref<16xf32, #tpu.memory_space<smem>>
    %2 = vector.broadcast %1 : f32 to vector<1x128xf32>
    %c0_1 = arith.constant 0 : index
    %3 = memref.load %arg1[%c0_1] : memref<16xf32, #tpu.memory_space<smem>>
    %4 = vector.broadcast %3 : f32 to vector<1x128xf32>
    %5 = arith.mulf %0, %4 : vector<1x128xf32>
    %c5 = arith.constant 5 : index
    %6 = memref.load %arg1[%c5] : memref<16xf32, #tpu.memory_space<smem>>
    %7 = vector.broadcast %6 : f32 to vector<1x128xf32>
    %8 = arith.addf %5, %7 : vector<1x128xf32>
    %cst = arith.constant 0.000000e+00 : f32
    %9 = vector.broadcast %cst : f32 to vector<1x128xf32>
    %10 = arith.maximumf %8, %9 : vector<1x128xf32>
    %c10 = arith.constant 10 : index
    %11 = memref.load %arg1[%c10] : memref<16xf32, #tpu.memory_space<smem>>
    %12 = vector.broadcast %11 : f32 to vector<1x128xf32>
    %13 = arith.mulf %10, %12 : vector<1x128xf32>
    %14 = arith.addf %2, %13 : vector<1x128xf32>
    %c1 = arith.constant 1 : index
    %15 = memref.load %arg1[%c1] : memref<16xf32, #tpu.memory_space<smem>>
    %16 = vector.broadcast %15 : f32 to vector<1x128xf32>
    %17 = arith.mulf %0, %16 : vector<1x128xf32>
    %c6 = arith.constant 6 : index
    %18 = memref.load %arg1[%c6] : memref<16xf32, #tpu.memory_space<smem>>
    %19 = vector.broadcast %18 : f32 to vector<1x128xf32>
    %20 = arith.addf %17, %19 : vector<1x128xf32>
    %cst_2 = arith.constant 0.000000e+00 : f32
    %21 = vector.broadcast %cst_2 : f32 to vector<1x128xf32>
    %22 = arith.maximumf %20, %21 : vector<1x128xf32>
    %c11 = arith.constant 11 : index
    %23 = memref.load %arg1[%c11] : memref<16xf32, #tpu.memory_space<smem>>
    %24 = vector.broadcast %23 : f32 to vector<1x128xf32>
    %25 = arith.mulf %22, %24 : vector<1x128xf32>
    %26 = arith.addf %14, %25 : vector<1x128xf32>
    %c2 = arith.constant 2 : index
    %27 = memref.load %arg1[%c2] : memref<16xf32, #tpu.memory_space<smem>>
    %28 = vector.broadcast %27 : f32 to vector<1x128xf32>
    %29 = arith.mulf %0, %28 : vector<1x128xf32>
    %c7 = arith.constant 7 : index
    %30 = memref.load %arg1[%c7] : memref<16xf32, #tpu.memory_space<smem>>
    %31 = vector.broadcast %30 : f32 to vector<1x128xf32>
    %32 = arith.addf %29, %31 : vector<1x128xf32>
    %cst_3 = arith.constant 0.000000e+00 : f32
    %33 = vector.broadcast %cst_3 : f32 to vector<1x128xf32>
    %34 = arith.maximumf %32, %33 : vector<1x128xf32>
    %c12 = arith.constant 12 : index
    %35 = memref.load %arg1[%c12] : memref<16xf32, #tpu.memory_space<smem>>
    %36 = vector.broadcast %35 : f32 to vector<1x128xf32>
    %37 = arith.mulf %34, %36 : vector<1x128xf32>
    %38 = arith.addf %26, %37 : vector<1x128xf32>
    %c3 = arith.constant 3 : index
    %39 = memref.load %arg1[%c3] : memref<16xf32, #tpu.memory_space<smem>>
    %40 = vector.broadcast %39 : f32 to vector<1x128xf32>
    %41 = arith.mulf %0, %40 : vector<1x128xf32>
    %c8 = arith.constant 8 : index
    %42 = memref.load %arg1[%c8] : memref<16xf32, #tpu.memory_space<smem>>
    %43 = vector.broadcast %42 : f32 to vector<1x128xf32>
    %44 = arith.addf %41, %43 : vector<1x128xf32>
    %cst_4 = arith.constant 0.000000e+00 : f32
    %45 = vector.broadcast %cst_4 : f32 to vector<1x128xf32>
    %46 = arith.maximumf %44, %45 : vector<1x128xf32>
    %c13 = arith.constant 13 : index
    %47 = memref.load %arg1[%c13] : memref<16xf32, #tpu.memory_space<smem>>
    %48 = vector.broadcast %47 : f32 to vector<1x128xf32>
    %49 = arith.mulf %46, %48 : vector<1x128xf32>
    %50 = arith.addf %38, %49 : vector<1x128xf32>
    %c4 = arith.constant 4 : index
    %51 = memref.load %arg1[%c4] : memref<16xf32, #tpu.memory_space<smem>>
    %52 = vector.broadcast %51 : f32 to vector<1x128xf32>
    %53 = arith.mulf %0, %52 : vector<1x128xf32>
    %c9 = arith.constant 9 : index
    %54 = memref.load %arg1[%c9] : memref<16xf32, #tpu.memory_space<smem>>
    %55 = vector.broadcast %54 : f32 to vector<1x128xf32>
    %56 = arith.addf %53, %55 : vector<1x128xf32>
    %cst_5 = arith.constant 0.000000e+00 : f32
    %57 = vector.broadcast %cst_5 : f32 to vector<1x128xf32>
    %58 = arith.maximumf %56, %57 : vector<1x128xf32>
    %c14 = arith.constant 14 : index
    %59 = memref.load %arg1[%c14] : memref<16xf32, #tpu.memory_space<smem>>
    %60 = vector.broadcast %59 : f32 to vector<1x128xf32>
    %61 = arith.mulf %58, %60 : vector<1x128xf32>
    %62 = arith.addf %50, %61 : vector<1x128xf32>
    %c0_6 = arith.constant 0 : index
    %c0_7 = arith.constant 0 : index
    %63 = vector.load %arg3[%c0_6, %c0_7] : memref<1x128xf32, #tpu.memory_space<vmem>>, vector<1x128xf32>
    tpu.vector_store %arg3[%c0_6, %c0_7], %62 {strides = array<i32>} : memref<1x128xf32, #tpu.memory_space<vmem>>, vector<1x128xf32>,
    return
  }
  func.func @transform_0(%arg0: i32) -> i32 {
    %c0_i32 = arith.constant 0 : i32
    %c0_i32_0 = arith.constant 0 : i32
    return %c0_i32 : i32
  }
  func.func @transform_1(%arg0: i32) -> (i32, i32) {
    %c0_i32 = arith.constant 0 : i32
    %c0_i32_0 = arith.constant 0 : i32
    return %arg0, %c0_i32 : i32, i32
  }
  func.func @transform_2(%arg0: i32) -> (i32, i32) {
    %c0_i32 = arith.constant 0 : i32
    %c0_i32_0 = arith.constant 0 : i32
    return %arg0, %c0_i32 : i32, i32
  }
}

</mosaic_0001>

<bundles_post_ra>
// kernel: net_forward.1
= control target key start
LH: loop header
LB: loop body
LE: loop exit
PB: predicated region body
PF: predicated region fallthrough
CT: control target
= control target key end

     0   :  { %7 = vsyncpa [#allocation3], 0  ;;  %s164_s0 = inlined_call_operand.vmem [shape: f32[16], index: 0, kind: input, shape index: {}]   ;;  %s165_s1 = inlined_call_operand.vmem [shape: f32[1,128], index: 1, kind: input, shape index: {}]   ;;  %s166_s2 = inlined_call_operand.vmem [shape: f32[1,128], index: 2, kind: output, shape index: {}]  }
   0x1   :  { %s14_s11 = sshll.u32 %s164_s0, 4  ;;  %s15_s11 = int_to_ptr.vmem [resolvable:$true] %s14_s11 }
   0x2   :  { %s104_s12 = scalar_lea.vmem %s15_s11, 16  ;;  %p109_p1 = scmp.lt.s32.totalorder %s15_s11, %s15_s11 }
   0x3   :  { %p105_p0 = scmp.ne.s32.totalorder %s15_s11, %s104_s12  ;;  %p110_p2 = scmp.lt.s32.totalorder %s104_s12, %s104_s12 }
   0x5   :  { %p111_p3 = por %p110_p2, %p109_p1 }
   0x7   :  { %p112_p4 = pnand %p111_p3, %p105_p0 }
   0x9   :  { %115 = shalt.err (!%p112_p4)
}
   0xa   :  { %s118_s13 = smov [#allocation2]  }
   0xb   :  { %17 = dma.vmem_to_smem %s15_s11, 16, %s118_s13, [#allocation3]  }
   0xc   :  { %116 = dma.done.wait [#allocation3], 16  }
   0xd   :  { %117 = vsyncadd [#allocation3], 4294967280 }
   0xe   :  { %23 = sfence }
   0xf   :  { %s137_s14 = sld [smem:[#allocation2 + $0xf]]  ;;  %s27_s15 = sld [smem:[#allocation2]]  ;;  %v24_v0 = vld [vmem:[%s165_s1] sm:$0x1] }
  0x10   :  { %s89_s16 = sld [smem:[#allocation2 + $0x5]]  ;;  %s139_s17 = sld [smem:[#allocation2 + $0xa]] }
  0x11   :  { %s91_s0 = sld [smem:[#allocation2 + $0x1]]  ;;  %s92_s18 = sld [smem:[#allocation2 + $0x6]] }
  0x12   :  { %s141_s19 = sld [smem:[#allocation2 + $0xb]]  ;;  %s94_s20 = sld [smem:[#allocation2 + $0x2]] }
  0x13   :  { %s95_s23 = sld [smem:[#allocation2 + $0x7]]  ;;  %s146_s24 = sld [smem:[#allocation2 + $0xc]] }
  0x14   :  { %s97_s25 = sld [smem:[#allocation2 + $0x3]]  ;;  %s148_s26 = sld [smem:[#allocation2 + $0x8]] }
  0x15   :  { %v28_v1 = vstv %s27_s15  ;;  %s100_s27 = sld [smem:[#allocation2 + $0x4]]  ;;  %s150_s28 = sld [smem:[#allocation2 + $0xd]]  ;;  %v26_v6 = vstv %s137_s14 }
  0x16   :  { %v29_v2 = vmul.f32 %v28_v1, %v24_v0  ;;  %v31_v3 = vstv %s89_s16  ;;  %s101_s29 = sld [smem:[#allocation2 + $0x9]]  ;;  %s152_s1 = sld [smem:[#allocation2 + $0xe]]  ;;  %v35_v10 = vstv %s139_s17 }
  0x17   :  { %v39_v4 = vstv %s91_s0  ;;  %v42_v5 = vstv %s92_s18 }
  0x18   :  { %v32_v7 = vadd.f32 %v31_v3, %v29_v2  ;;  %v40_v8 = vmul.f32 %v39_v4, %v24_v0  ;;  %v50_v9 = vstv %s94_s20  ;;  %v46_v11 = vstv %s141_s19 }
  0x19   :  { %v51_v12 = vmul.f32 %v50_v9, %v24_v0  ;;  %v53_v13 = vstv %s95_s23  ;;  %v57_v19 = vstv %s146_s24 }
  0x1a   :  { %v33_v14 = vmax.f32 %v32_v7, 0.0  ;;  %v43_v15 = vadd.f32 %v42_v5, %v40_v8  ;;  %v61_v16 = vstv %s97_s25  ;;  %v64_v17 = vstv %s148_s26 }
  0x1b   :  { %v54_v18 = vadd.f32 %v53_v13, %v51_v12  ;;  %v62_v20 = vmul.f32 %v61_v16, %v24_v0  ;;  %v72_v21 = vstv %s100_s27  ;;  %v68_v30 = vstv %s150_s28 }
  0x1c   :  { %v36_v22 = vmul.f32 %v35_v10, %v33_v14  ;;  %v44_v23 = vmax.f32 %v43_v15, 0.0  ;;  %v73_v24 = vmul.f32 %v72_v21, %v24_v0  ;;  %v75_v25 = vstv %s101_s29 }
  0x1d   :  { %v55_v26 = vmax.f32 %v54_v18, 0.0  ;;  %v65_v27 = vadd.f32 %v64_v17, %v62_v20  ;;  %v79_v34 = vstv %s152_s1 }
  0x1e   :  { %v37_v28 = vadd.f32 %v36_v22, %v26_v6  ;;  %v47_v29 = vmul.f32 %v46_v11, %v44_v23  ;;  %v76_v31 = vadd.f32 %v75_v25, %v73_v24 }
  0x1f   :  { %v58_v32 = vmul.f32 %v57_v19, %v55_v26  ;;  %v66_v33 = vmax.f32 %v65_v27, 0.0 }
  0x20   :  { %v48_v35 = vadd.f32 %v47_v29, %v37_v28  ;;  %v77_v36 = vmax.f32 %v76_v31, 0.0 }
  0x21   :  { %v69_v37 = vmul.f32 %v68_v30, %v66_v33 }
  0x22   :  { %v59_v38 = vadd.f32 %v58_v32, %v48_v35  ;;  %v80_v39 = vmul.f32 %v79_v34, %v77_v36 }
  0x24   :  { %v70_v40 = vadd.f32 %v69_v37, %v59_v38 }
  0x26   :  { %v81_v41 = vadd.f32 %v80_v39, %v70_v40 }
  0x28   :  { %82 = vst [vmem:[%s166_s2] sm:$0x1] %v81_v41 }
  0x29   :  { %87 = vsyncpa [#allocation3], 1 }

</bundles_post_ra>
